<compile_context>
chip_gen: v5e
topology: v5e:2x2
jax: 0.10.0
libtpu: 0.0.40
codegen_flags: <defaults>
</compile_context>

<pallas_src>
import jax
import jax.numpy as jnp
from jax.experimental import pallas as pl
from jax.experimental.pallas import tpu as pltpu

P = 8  # batch rows packed per sublane row (P * num_outputs = 128 lanes for Nout=16)


def packed_mlp_softmax_kernel(x_ref, w1_ref, b1_ref, w2_ref, b2_ref,
                              w3_ref, b3_ref, seg_ref, o_ref):
    # x_ref: (TBP, P*Fin) f32 — P batch rows packed per sublane row.
    xp = x_ref[...]

    # Linear 1 + ReLU (per packed sample: Fin -> 5), block-diagonal weights.
    h1 = jnp.dot(xp, w1_ref[...], preferred_element_type=jnp.float32)
    h1 = jnp.maximum(h1 + b1_ref[...], 0.0)

    # Linear 2 + ReLU (5 -> 20)
    h2 = jnp.dot(h1, w2_ref[...], preferred_element_type=jnp.float32)
    h2 = jnp.maximum(h2 + b2_ref[...], 0.0)

    # Linear 3 (20 -> Nout): packed logits (TBP, P*Nout), lane-dense for Nout=16.
    logits = jnp.dot(h2, w3_ref[...], preferred_element_type=jnp.float32)
    logits = logits + b3_ref[...]

    # Dropout (eval mode) == identity.

    # Softmax over each Nout-lane group.
    # Subtract the packed-row max: identical constant inside every group, so it
    # cancels exactly; exp arguments are <= 0 (no overflow).
    m = jnp.max(logits, axis=-1, keepdims=True)
    e = jnp.exp(logits - m)
    # Segmented sum + broadcast back to all lanes of the group in one MXU
    # matmul against the 0/1 group matrix (XLU stays idle).
    denom = jnp.dot(e, seg_ref[...], preferred_element_type=jnp.float32)
    inv = pl.reciprocal(denom, approx=True)
    inv = inv * (2.0 - denom * inv)          # one Newton step -> ~f32-exact
    o_ref[...] = (e * inv).astype(o_ref.dtype)


def on_module_forward(x, params, *, block_rows=16384, out_dtype=jnp.float32):
    """x: (B, num_inputs) f32 -> (B, num_outputs) softmax probabilities.

    Jit the call so the pack/unpack reshapes around pallas_call are
    metadata-only (no extra HBM passes).
    """
    w1, b1, w2, b2, w3, b3 = params
    B, num_inputs = x.shape
    num_outputs = w3.shape[1]

    # --- pack P batch rows per sublane row (free row-major reshape). Pad only
    # if B is not a multiple of P (<= 7 extra rows; prefer B % 8 == 0 callers).
    pad = (-B) % P
    if pad:
        x = jnp.pad(x, ((0, pad), (0, 0)))
    b_pad = B + pad
    rows_packed = b_pad // P
    x_packed = x.reshape(rows_packed, P * num_inputs)

    # --- block-diagonal (packed) weights, tiled biases, segment-sum matrix.
    # Tiny (few hundred KB); VMEM-resident via constant index_maps.
    eye = jnp.eye(P, dtype=jnp.float32)
    w1p = jnp.kron(eye, w1.astype(jnp.float32))            # (P*Fin, P*5)
    w2p = jnp.kron(eye, w2.astype(jnp.float32))            # (P*5,  P*20)
    w3p = jnp.kron(eye, w3.astype(jnp.float32))            # (P*20, P*Nout)
    b1p = jnp.tile(b1.reshape(1, -1), (1, P))
    b2p = jnp.tile(b2.reshape(1, -1), (1, P))
    b3p = jnp.tile(b3.reshape(1, -1), (1, P))
    seg = jnp.kron(eye, jnp.ones((num_outputs, num_outputs), jnp.float32))

    # --- tiling over packed rows. Block second-minor dim must be a multiple
    # of 8 unless it equals the full extent; the ragged last block is masked.
    tbp_max = max(block_rows // P, 8)
    if rows_packed <= tbp_max:
        tbp = rows_packed                 # single block == full extent
    else:
        tbp = (tbp_max // 8) * 8
    grid = (pl.cdiv(rows_packed, tbp),)

    def resident(a):
        return pl.BlockSpec(a.shape, lambda i: (0,) * a.ndim)

    out_packed = pl.pallas_call(
        packed_mlp_softmax_kernel,
        out_shape=jax.ShapeDtypeStruct((rows_packed, P * num_outputs), out_dtype),
        grid=grid,
        in_specs=[
            pl.BlockSpec((tbp, P * num_inputs), lambda i: (i, 0)),   # x tile
            resident(w1p), resident(b1p),
            resident(w2p), resident(b2p),
            resident(w3p), resident(b3p),
            resident(seg),
        ],
        out_specs=pl.BlockSpec((tbp, P * num_outputs), lambda i: (i, 0)),
        compiler_params=pltpu.CompilerParams(
            dimension_semantics=("parallel",),       # v7x megacore sharding
            vmem_limit_bytes=32 * 1024 * 1024),      # <= physical on v5e/v6e/v7x
    )(x_packed, w1p, b1p, w2p, b2p, w3p, b3p, seg)

    out = out_packed.reshape(b_pad, num_outputs)     # free metadata reshape
    return out if pad == 0 else out[:B]


def init_params(key, num_inputs, num_outputs):
    """Deterministic parameter init (uniform, Linear-style fan-in scaling).
    Weights stored as (in, out) so the forward computes x @ W + b."""
    dims = [(num_inputs, 5), (5, 20), (20, num_outputs)]
    params = []
    for fan_in, fan_out in dims:
        key, kw, kb = jax.random.split(key, 3)
        bound = 1.0 / jnp.sqrt(fan_in)
        w = jax.random.uniform(kw, (fan_in, fan_out), jnp.float32,
                               minval=-bound, maxval=bound)
        b = jax.random.uniform(kb, (1, fan_out), jnp.float32,
                               minval=-bound, maxval=bound)
        params.extend([w, b])
    return tuple(params)


def reference_forward(x, params):
    """Pure-JAX f32 reference (eval-mode dropout)."""
    w1, b1, w2, b2, w3, b3 = params
    h1 = jnp.maximum(x @ w1 + b1, 0.0)
    h2 = jnp.maximum(h1 @ w2 + b2, 0.0)
    logits = h2 @ w3 + b3
    return jax.nn.softmax(logits, axis=1)


if __name__ == "__main__":
    num_inputs, num_outputs = 32, 16

    key = jax.random.PRNGKey(0)
    key, kx1, kx2 = jax.random.split(key, 3)
    params = init_params(key, num_inputs, num_outputs)

    # Fast path: B % 8 == 0 (no pad, no slice), jitted so the pack/unpack
    # reshapes are metadata-only. Single grid step at this small size.
    x1 = jax.random.normal(kx1, (512, num_inputs), jnp.float32)
    fwd = jax.jit(on_module_forward)
    out1 = jax.block_until_ready(fwd(x1, params))
    assert out1.shape == (512, num_outputs)
    ref1 = reference_forward(x1, params)
    assert bool(jnp.all(jnp.abs(jnp.sum(out1, axis=1) - 1.0) < 1e-2))
    assert bool(jnp.all(jnp.abs(out1 - ref1) < 1e-2))

    # Ragged path: B % 8 != 0 (pad fallback) + multi-step grid with a masked
    # final block (block_rows=128 -> packed tile of 16 rows, grid=(4,)).
    x2 = jax.random.normal(kx2, (500, num_inputs), jnp.float32)
    out2 = jax.block_until_ready(on_module_forward(x2, params, block_rows=128))
    assert out2.shape == (500, num_outputs)
    ref2 = reference_forward(x2, params)
    assert bool(jnp.all(jnp.abs(jnp.sum(out2, axis=1) - 1.0) < 1e-2))
    assert bool(jnp.all(jnp.abs(out2 - ref2) < 1e-2))

    print("KERNEL_OK")
</pallas_src>

<mosaic_0001>
module attributes {stable_mosaic.version = 11 : i64} {
  func.func @packed_mlp_softmax_kernel(%arg0: i32, %arg1: memref<64x256xf32, #tpu.memory_space<vmem>>, %arg2: memref<256x40xf32, #tpu.memory_space<vmem>>, %arg3: memref<1x40xf32, #tpu.memory_space<vmem>>, %arg4: memref<40x160xf32, #tpu.memory_space<vmem>>, %arg5: memref<1x160xf32, #tpu.memory_space<vmem>>, %arg6: memref<160x128xf32, #tpu.memory_space<vmem>>, %arg7: memref<1x128xf32, #tpu.memory_space<vmem>>, %arg8: memref<128x128xf32, #tpu.memory_space<vmem>>, %arg9: memref<64x128xf32, #tpu.memory_space<vmem>>) attributes {dimension_semantics = [#tpu.dimension_semantics<parallel>], iteration_bounds = array<i64: 1>, scalar_prefetch = 0 : i64, scratch_operands = 0 : i64, tpu.core_type = #tpu.core_type<tc>, window_params = [{transform_indices = @transform_0, window_bounds = array<i64: 64, 256>}, {pipeline_mode = #tpu.pipeline_mode<synchronous>, transform_indices = @transform_1, window_bounds = array<i64: 256, 40>}, {pipeline_mode = #tpu.pipeline_mode<synchronous>, transform_indices = @transform_2, window_bounds = array<i64: 1, 40>}, {pipeline_mode = #tpu.pipeline_mode<synchronous>, transform_indices = @transform_3, window_bounds = array<i64: 40, 160>}, {pipeline_mode = #tpu.pipeline_mode<synchronous>, transform_indices = @transform_4, window_bounds = array<i64: 1, 160>}, {pipeline_mode = #tpu.pipeline_mode<synchronous>, transform_indices = @transform_5, window_bounds = array<i64: 160, 128>}, {pipeline_mode = #tpu.pipeline_mode<synchronous>, transform_indices = @transform_6, window_bounds = array<i64: 1, 128>}, {pipeline_mode = #tpu.pipeline_mode<synchronous>, transform_indices = @transform_7, window_bounds = array<i64: 128, 128>}, {transform_indices = @transform_8, window_bounds = array<i64: 64, 128>}]} {
    %c0 = arith.constant 0 : index
    %c0_0 = arith.constant 0 : index
    %0 = vector.load %arg1[%c0, %c0_0] : memref<64x256xf32, #tpu.memory_space<vmem>>, vector<64x256xf32>
    %c0_1 = arith.constant 0 : index
    %c0_2 = arith.constant 0 : index
    %1 = vector.load %arg2[%c0_1, %c0_2] : memref<256x40xf32, #tpu.memory_space<vmem>>, vector<256x40xf32>
    %cst = arith.constant dense<0.000000e+00> : vector<64x40xf32>
    %2 = tpu.matmul %0, %1, %cst {dimension_numbers = #tpu.dot_dimension_numbers<[1], [0], [0], [1], [0, 0, 1, 1], [], []>} : vector<64x256xf32>, vector<256x40xf32>, vector<64x40xf32> -> vector<64x40xf32>
    %c0_3 = arith.constant 0 : index
    %c0_4 = arith.constant 0 : index
    %3 = vector.load %arg3[%c0_3, %c0_4] : memref<1x40xf32, #tpu.memory_space<vmem>>, vector<1x40xf32>
    %4 = vector.broadcast %3 : vector<1x40xf32> to vector<64x40xf32>
    %5 = arith.addf %2, %4 : vector<64x40xf32>
    %cst_5 = arith.constant 0.000000e+00 : f32
    %6 = vector.broadcast %cst_5 : f32 to vector<64x40xf32>
    %7 = arith.maximumf %5, %6 : vector<64x40xf32>
    %c0_6 = arith.constant 0 : index
    %c0_7 = arith.constant 0 : index
    %8 = vector.load %arg4[%c0_6, %c0_7] : memref<40x160xf32, #tpu.memory_space<vmem>>, vector<40x160xf32>
    %cst_8 = arith.constant dense<0.000000e+00> : vector<64x160xf32>
    %9 = tpu.matmul %7, %8, %cst_8 {dimension_numbers = #tpu.dot_dimension_numbers<[1], [0], [0], [1], [0, 0, 1, 1], [], []>} : vector<64x40xf32>, vector<40x160xf32>, vector<64x160xf32> -> vector<64x160xf32>
    %c0_9 = arith.constant 0 : index
    %c0_10 = arith.constant 0 : index
    %10 = vector.load %arg5[%c0_9, %c0_10] : memref<1x160xf32, #tpu.memory_space<vmem>>, vector<1x160xf32>
    %11 = vector.broadcast %10 : vector<1x160xf32> to vector<64x160xf32>
    %12 = arith.addf %9, %11 : vector<64x160xf32>
    %cst_11 = arith.constant 0.000000e+00 : f32
    %13 = vector.broadcast %cst_11 : f32 to vector<64x160xf32>
    %14 = arith.maximumf %12, %13 : vector<64x160xf32>
    %c0_12 = arith.constant 0 : index
    %c0_13 = arith.constant 0 : index
    %15 = vector.load %arg6[%c0_12, %c0_13] : memref<160x128xf32, #tpu.memory_space<vmem>>, vector<160x128xf32>
    %cst_14 = arith.constant dense<0.000000e+00> : vector<64x128xf32>
    %16 = tpu.matmul %14, %15, %cst_14 {dimension_numbers = #tpu.dot_dimension_numbers<[1], [0], [0], [1], [0, 0, 1, 1], [], []>} : vector<64x160xf32>, vector<160x128xf32>, vector<64x128xf32> -> vector<64x128xf32>
    %c0_15 = arith.constant 0 : index
    %c0_16 = arith.constant 0 : index
    %17 = vector.load %arg7[%c0_15, %c0_16] : memref<1x128xf32, #tpu.memory_space<vmem>>, vector<1x128xf32>
    %18 = vector.broadcast %17 : vector<1x128xf32> to vector<64x128xf32>
    %19 = arith.addf %16, %18 : vector<64x128xf32>
    %cst_17 = arith.constant dense<0xFF800000> : vector<64xf32>
    %20 = vector.multi_reduction <maximumf>, %19, %cst_17 [1] : vector<64x128xf32> to vector<64xf32>
    %21 = vector.shape_cast %20 : vector<64xf32> to vector<64x1xf32>
    %22 = vector.broadcast %21 : vector<64x1xf32> to vector<64x128xf32>
    %23 = arith.subf %19, %22 : vector<64x128xf32>
    %24 = math.exp %23 : vector<64x128xf32>
    %c0_18 = arith.constant 0 : index
    %c0_19 = arith.constant 0 : index
    %25 = vector.load %arg8[%c0_18, %c0_19] : memref<128x128xf32, #tpu.memory_space<vmem>>, vector<128x128xf32>
    %cst_20 = arith.constant dense<0.000000e+00> : vector<64x128xf32>
    %26 = tpu.matmul %24, %25, %cst_20 {dimension_numbers = #tpu.dot_dimension_numbers<[1], [0], [0], [1], [0, 0, 1, 1], [], []>} : vector<64x128xf32>, vector<128x128xf32>, vector<64x128xf32> -> vector<64x128xf32>
    %27 = tpu.reciprocal %26 {approx = true} : vector<64x128xf32> -> vector<64x128xf32>
    %28 = arith.mulf %26, %27 : vector<64x128xf32>
    %cst_21 = arith.constant 2.000000e+00 : f32
    %29 = vector.broadcast %cst_21 : f32 to vector<64x128xf32>
    %30 = arith.subf %29, %28 : vector<64x128xf32>
    %31 = arith.mulf %27, %30 : vector<64x128xf32>
    %32 = arith.mulf %24, %31 : vector<64x128xf32>
    %c0_22 = arith.constant 0 : index
    %c0_23 = arith.constant 0 : index
    %33 = vector.load %arg9[%c0_22, %c0_23] : memref<64x128xf32, #tpu.memory_space<vmem>>, vector<64x128xf32>
    tpu.vector_store %arg9[%c0_22, %c0_23], %32 {strides = array<i32>} : memref<64x128xf32, #tpu.memory_space<vmem>>, vector<64x128xf32>,
    return
  }
  func.func @transform_0(%arg0: i32) -> (i32, i32) {
    %c0_i32 = arith.constant 0 : i32
    %c0_i32_0 = arith.constant 0 : i32
    return %arg0, %c0_i32 : i32, i32
  }
  func.func @transform_1(%arg0: i32) -> (i32, i32) {
    %c0_i32 = arith.constant 0 : i32
    %c0_i32_0 = arith.constant 0 : i32
    %c0_i32_1 = arith.constant 0 : i32
    return %c0_i32, %c0_i32_0 : i32, i32
  }
  func.func @transform_2(%arg0: i32) -> (i32, i32) {
    %c0_i32 = arith.constant 0 : i32
    %c0_i32_0 = arith.constant 0 : i32
    %c0_i32_1 = arith.constant 0 : i32
    return %c0_i32, %c0_i32_0 : i32, i32
  }
  func.func @transform_3(%arg0: i32) -> (i32, i32) {
    %c0_i32 = arith.constant 0 : i32
    %c0_i32_0 = arith.constant 0 : i32
    %c0_i32_1 = arith.constant 0 : i32
    return %c0_i32, %c0_i32_0 : i32, i32
  }
  func.func @transform_4(%arg0: i32) -> (i32, i32) {
    %c0_i32 = arith.constant 0 : i32
    %c0_i32_0 = arith.constant 0 : i32
    %c0_i32_1 = arith.constant 0 : i32
    return %c0_i32, %c0_i32_0 : i32, i32
  }
  func.func @transform_5(%arg0: i32) -> (i32, i32) {
    %c0_i32 = arith.constant 0 : i32
    %c0_i32_0 = arith.constant 0 : i32
    %c0_i32_1 = arith.constant 0 : i32
    return %c0_i32, %c0_i32_0 : i32, i32
  }
  func.func @transform_6(%arg0: i32) -> (i32, i32) {
    %c0_i32 = arith.constant 0 : i32
    %c0_i32_0 = arith.constant 0 : i32
    %c0_i32_1 = arith.constant 0 : i32
    return %c0_i32, %c0_i32_0 : i32, i32
  }
  func.func @transform_7(%arg0: i32) -> (i32, i32) {
    %c0_i32 = arith.constant 0 : i32
    %c0_i32_0 = arith.constant 0 : i32
    %c0_i32_1 = arith.constant 0 : i32
    return %c0_i32, %c0_i32_0 : i32, i32
  }
  func.func @transform_8(%arg0: i32) -> (i32, i32) {
    %c0_i32 = arith.constant 0 : i32
    %c0_i32_0 = arith.constant 0 : i32
    return %arg0, %c0_i32 : i32, i32
  }
}

</mosaic_0001>

<bundles_post_ra>
// kernel: on_module_forward.1
= control target key start
LH: loop header
LB: loop body
LE: loop exit
PB: predicated region body
PF: predicated region fallthrough
CT: control target
= control target key end

     0   :  { %vm187_vm0 = vcmask 326656   ;;  %vm334_vm1 = vcmask 261120   ;;  %s1092_s1 = inlined_call_operand.vmem [shape: f32[256,40], index: 1, kind: input, shape index: {}]   ;;  %s1093_s2 = inlined_call_operand.vmem [shape: f32[1,40], index: 2, kind: input, shape index: {}]   ;;  %s1094_s0 = inlined_call_operand.vmem [shape: f32[64,256], index: 0, kind: input, shape index: {}]   ;;  %s1095_s3 = inlined_call_operand.vmem [shape: f32[40,160], index: 3, kind: input, shape index: {}]   ;;  %s1096_s5 = inlined_call_operand.vmem [shape: f32[160,128], index: 5, kind: input, shape index: {}]   ;;  %s1097_s6 = inlined_call_operand.vmem [shape: f32[1,128], index: 6, kind: input, shape index: {}]   ;;  %s1098_s4 = inlined_call_operand.vmem [shape: f32[1,160], index: 4, kind: input, shape index: {}]   ;;  %s1099_s7 = inlined_call_operand.vmem [shape: f32[128,128], index: 7, kind: input, shape index: {}]   ;;  %s1100_s8 = inlined_call_operand.vmem [shape: f32[64,128], index: 8, kind: output, shape index: {}]  }
   0x1   :  { %v60_v0 = vld [vmem:[%s1092_s1 + $0x78] sm:$0xff]  ;;  %v59_v1 = vld [vmem:[%s1092_s1 + $0x70] sm:$0xff]  ;;  %v58_v2 = vld [vmem:[%s1092_s1 + $0x68] sm:$0xff] }
   0x2   :  { %614 = vmatpush.msra.mxu1 %v60_v0  ;;  %81 = vmatpush.msra.mxu0 %v60_v0  ;;  %v57_v3 = vld [vmem:[%s1092_s1 + $0x60] sm:$0xff]  ;;  %v56_v4 = vld [vmem:[%s1092_s1 + $0x58] sm:$0xff]  ;;  %v55_v5 = vld [vmem:[%s1092_s1 + $0x50] sm:$0xff] }
   0x3   :  { %v54_v6 = vld [vmem:[%s1092_s1 + $0x48] sm:$0xff]  ;;  %v53_v7 = vld [vmem:[%s1092_s1 + $0x40] sm:$0xff]  ;;  %v52_v8 = vld [vmem:[%s1092_s1 + $0x38] sm:$0xff] }
   0x4   :  { %615 = vmatpush.msra.mxu1 %v59_v1  ;;  %82 = vmatpush.msra.mxu0 %v59_v1  ;;  %v51_v9 = vld [vmem:[%s1092_s1 + $0x30] sm:$0xff]  ;;  %v50_v10 = vld [vmem:[%s1092_s1 + $0x28] sm:$0xff]  ;;  %v49_v11 = vld [vmem:[%s1092_s1 + $0x20] sm:$0xff] }
   0x5   :  { %v48_v12 = vld [vmem:[%s1092_s1 + $0x18] sm:$0xff]  ;;  %v47_v13 = vld [vmem:[%s1092_s1 + $0x10] sm:$0xff]  ;;  %v46_v14 = vld [vmem:[%s1092_s1 + $0x8] sm:$0xff] }
   0x6   :  { %616 = vmatpush.msra.mxu1 %v58_v2  ;;  %83 = vmatpush.msra.mxu0 %v58_v2  ;;  %v45_v15 = vld [vmem:[%s1092_s1] sm:$0xff]  ;;  %v76_v18 = vld [vmem:[%s1092_s1 + $0xf8] sm:$0xff]  ;;  %v75_v19 = vld [vmem:[%s1092_s1 + $0xf0] sm:$0xff] }
   0x7   :  { %v37_v16 = vld [vmem:[%s1094_s0 + $0x40] sm:$0xff]  ;;  %v74_v20 = vld [vmem:[%s1092_s1 + $0xe8] sm:$0xff]  ;;  %v39_v22 = vld [vmem:[%s1094_s0 + $0x50] sm:$0xff] }
   0x8   :  { %617 = vmatpush.msra.mxu1 %v57_v3  ;;  %84 = vmatpush.msra.mxu0 %v57_v3  ;;  %v29_v17 = vld [vmem:[%s1094_s0] sm:$0xff]  ;;  %v31_v23 = vld [vmem:[%s1094_s0 + $0x10] sm:$0xff]  ;;  %v72_v24 = vld [vmem:[%s1092_s1 + $0xd8] sm:$0xff] }
   0x9   :  { %v73_v21 = vld [vmem:[%s1092_s1 + $0xe0] sm:$0xff]  ;;  %v71_v25 = vld [vmem:[%s1092_s1 + $0xd0] sm:$0xff]  ;;  %v70_v26 = vld [vmem:[%s1092_s1 + $0xc8] sm:$0xff] }
   0xa   :  { %618 = vmatpush.msra.mxu1 %v56_v4  ;;  %85 = vmatpush.msra.mxu0 %v56_v4  ;;  %v69_v27 = vld [vmem:[%s1092_s1 + $0xc0] sm:$0xff]  ;;  %v68_v30 = vld [vmem:[%s1092_s1 + $0xb8] sm:$0xff]  ;;  %v67_v31 = vld [vmem:[%s1092_s1 + $0xb0] sm:$0xff] }
   0xb   :  { %v41_v28 = vld [vmem:[%s1094_s0 + $0x60] sm:$0xff]  ;;  %v66_v32 = vld [vmem:[%s1092_s1 + $0xa8] sm:$0xff]  ;;  %v43_v34 = vld [vmem:[%s1094_s0 + $0x70] sm:$0xff] }
   0xc   :  { %619 = vmatpush.msra.mxu1 %v55_v5  ;;  %86 = vmatpush.msra.mxu0 %v55_v5  ;;  %v33_v29 = vld [vmem:[%s1094_s0 + $0x20] sm:$0xff]  ;;  %v35_v35 = vld [vmem:[%s1094_s0 + $0x30] sm:$0xff]  ;;  %v64_v36 = vld [vmem:[%s1092_s1 + $0x98] sm:$0xff] }
   0xd   :  { %v65_v33 = vld [vmem:[%s1092_s1 + $0xa0] sm:$0xff]  ;;  %v63_v37 = vld [vmem:[%s1092_s1 + $0x90] sm:$0xff]  ;;  %v62_v38 = vld [vmem:[%s1092_s1 + $0x88] sm:$0xff] }
   0xe   :  { %620 = vmatpush.msra.mxu1 %v54_v6  ;;  %87 = vmatpush.msra.mxu0 %v54_v6  ;;  %v61_v39 = vld [vmem:[%s1092_s1 + $0x80] sm:$0xff]  ;;  %v30_v40 = vld [vmem:[%s1094_s0 + $0x8] sm:$0xff]  ;;  %v32_v41 = vld [vmem:[%s1094_s0 + $0x18] sm:$0xff] }
   0xf   :  { %v34_v42 = vld [vmem:[%s1094_s0 + $0x28] sm:$0xff]  ;;  %v36_v43 = vld [vmem:[%s1094_s0 + $0x38] sm:$0xff]  ;;  %v179_v48 = vld [vmem:[%s1095_s3 + $0x40] sm:$0xff] }
  0x10   :  { %621 = vmatpush.msra.mxu1 %v53_v7  ;;  %88 = vmatpush.msra.mxu0 %v53_v7  ;;  %v38_v44 = vld [vmem:[%s1094_s0 + $0x48] sm:$0xff]  ;;  %v40_v45 = vld [vmem:[%s1094_s0 + $0x58] sm:$0xff]  ;;  %v177_v50 = vld [vmem:[%s1095_s3 + $0x30] sm:$0xff] }
  0x11   :  { %v42_v46 = vld [vmem:[%s1094_s0 + $0x68] sm:$0xff]  ;;  %v44_v47 = vld [vmem:[%s1094_s0 + $0x78] sm:$0xff]  ;;  %223 = vmatpush.msra.mxu2 %v179_v48  ;;  %v175_v52 = vld [vmem:[%s1095_s3 + $0x20] sm:$0xff] }
  0x12   :  { %622 = vmatpush.msra.mxu1 %v52_v8  ;;  %89 = vmatpush.msra.mxu0 %v52_v8  ;;  %v180_v49 = vld [vmem:[%s1095_s3 + $0x48] sm:$0xff]  ;;  %v178_v51 = vld [vmem:[%s1095_s3 + $0x38] sm:$0xff]  ;;  %v173_v55 = vld [vmem:[%s1095_s3 + $0x10] sm:$0xff] }
  0x13   :  { %264 = vmatpush.msra.mxu3 %v180_v49  ;;  %224 = vmatpush.msra.mxu2 %v177_v50  ;;  %v176_v53 = vld [vmem:[%s1095_s3 + $0x28] sm:$0xff]  ;;  %v174_v56 = vld [vmem:[%s1095_s3 + $0x18] sm:$0xff]  ;;  %v171_v57 = vld [vmem:[%s1095_s3] sm:$0xff] }
  0x14   :  { %623 = vmatpush.msra.mxu1 %v51_v9  ;;  %90 = vmatpush.msra.mxu0 %v51_v9  ;;  %v172_v58 = vld [vmem:[%s1095_s3 + $0x8] sm:$0xff]  ;;  %v890_v63 = vld [vmem:[%s1093_s2] ss:$0 sm:$0xff]  ;;  %v312_v48 = vld [vmem:[%s1096_s5 + $0x10] sm:$0xff] }
  0x15   :  { %265 = vmatpush.msra.mxu3 %v178_v51  ;;  %225 = vmatpush.msra.mxu2 %v175_v52  ;;  %v311_v50 = vld [vmem:[%s1096_s5 + $0x8] sm:$0xff] }
  0x16   :  { %624 = vmatpush.msra.mxu1 %v50_v10  ;;  %91 = vmatpush.msra.mxu0 %v50_v10 }
  0x17   :  { %266 = vmatpush.msra.mxu3 %v176_v53  ;;  %226 = vmatpush.msra.mxu2 %v173_v55  ;;  %v181_v55 = vld [vmem:[%s1098_s4] sm:$0x3] }
  0x18   :  { %625 = vmatpush.msra.mxu1 %v49_v11  ;;  %92 = vmatpush.msra.mxu0 %v49_v11 }
  0x19   :  { %267 = vmatpush.msra.mxu3 %v174_v56  ;;  %227 = vmatpush.msra.mxu2 %v171_v57  ;;  %v183_v56 = vperm.slane %v181_v55, 0  ;;  %v184_v57 = vperm.slane %v181_v55, 1 }
  0x1a   :  { %626 = vmatpush.msra.mxu1 %v48_v12  ;;  %93 = vmatpush.msra.mxu0 %v48_v12 }
  0x1b   :  { %268 = vmatpush.msra.mxu3 %v172_v58 }
  0x1c   :  { %627 = vmatpush.msra.mxu1 %v47_v13  ;;  %94 = vmatpush.msra.mxu0 %v47_v13 }
  0x1e   :  { %628 = vmatpush.msra.mxu1 %v46_v14  ;;  %95 = vmatpush.msra.mxu0 %v46_v14 }
  0x20   :  { %629 = vmatpush.msra.mxu1 %v45_v15  ;;  %96 = vmatpush.msra.mxu0 %v45_v15 }
  0x21   :  { %109 = vmatmul.f32.vlgmr.msra.gmra.mxu1 %v37_v16  ;;  %97 = vmatmul.f32.vlgmr.msra.gmra.mxu0 %v29_v17 }
  0x22   :  { %122 = vmatpush.msrb.mxu1 %v76_v18 }
  0x24   :  { %123 = vmatpush.msrb.mxu1 %v75_v19  ;;  %v325_v19 = vld [vmem:[%s1096_s5 + $0x78] sm:$0xff] }
  0x25   :  { %359 = vmatpush.msrb.mxu2 %v325_v19 }
  0x26   :  { %124 = vmatpush.msrb.mxu1 %v74_v20  ;;  %v329_v20 = vld [vmem:[%s1096_s5 + $0x98] sm:$0xff] }
  0x27   :  { %412 = vmatpush.msrb.mxu3 %v329_v20 }
  0x28   :  { %125 = vmatpush.msrb.mxu1 %v73_v21  ;;  %v324_v21 = vld [vmem:[%s1096_s5 + $0x70] sm:$0xff] }
  0x29   :  { %112 = vmatmul.f32.gmra.mxu1 %v39_v22  ;;  %100 = vmatmul.f32.gmra.mxu0 %v31_v23  ;;  %v323_v23 = vld [vmem:[%s1096_s5 + $0x68] sm:$0xff] }
  0x2a   :  { %126 = vmatpush.msrb.mxu1 %v72_v24  ;;  %v328_v24 = vld [vmem:[%s1096_s5 + $0x90] sm:$0xff]  ;;  %360 = vmatpush.msrb.mxu2 %v324_v21 }
  0x2b   :  { %413 = vmatpush.msrb.mxu3 %v328_v24 }
  0x2c   :  { %127 = vmatpush.msrb.mxu1 %v71_v25  ;;  %361 = vmatpush.msrb.mxu2 %v323_v23 }
  0x2e   :  { %128 = vmatpush.msrb.mxu1 %v70_v26  ;;  %v327_v26 = vld [vmem:[%s1096_s5 + $0x88] sm:$0xff] }
  0x2f   :  { %414 = vmatpush.msrb.mxu3 %v327_v26 }
  0x30   :  { %129 = vmatpush.msrb.mxu1 %v69_v27 }
  0x31   :  { %115 = vmatmul.f32.gmra.mxu1 %v41_v28  ;;  %103 = vmatmul.f32.gmra.mxu0 %v33_v29  ;;  %v322_v28 = vld [vmem:[%s1096_s5 + $0x60] sm:$0xff] }
  0x32   :  { %130 = vmatpush.msrb.mxu1 %v68_v30  ;;  %v326_v29 = vld [vmem:[%s1096_s5 + $0x80] sm:$0xff]  ;;  %362 = vmatpush.msrb.mxu2 %v322_v28 }
  0x33   :  { %415 = vmatpush.msrb.mxu3 %v326_v29 }
  0x34   :  { %131 = vmatpush.msrb.mxu1 %v67_v31  ;;  %v321_v31 = vld [vmem:[%s1096_s5 + $0x58] sm:$0xff] }
  0x35   :  { %363 = vmatpush.msrb.mxu2 %v321_v31 }
  0x36   :  { %132 = vmatpush.msrb.mxu1 %v66_v32  ;;  %v320_v32 = vld [vmem:[%s1096_s5 + $0x50] sm:$0xff] }
  0x37   :  { %364 = vmatpush.msrb.mxu2 %v320_v32 }
  0x38   :  { %133 = vmatpush.msrb.mxu1 %v65_v33 }
  0x39   :  { %118 = vmatmul.f32.gmra.mxu1 %v43_v34  ;;  %106 = vmatmul.f32.gmra.mxu0 %v35_v35  ;;  %v319_v34 = vld [vmem:[%s1096_s5 + $0x48] sm:$0xff] }
  0x3a   :  { %134 = vmatpush.msrb.mxu1 %v64_v36  ;;  %365 = vmatpush.msrb.mxu2 %v319_v34 }
  0x3c   :  { %135 = vmatpush.msrb.mxu1 %v63_v37  ;;  %v318_v37 = vld [vmem:[%s1096_s5 + $0x40] sm:$0xff] }
  0x3d   :  { %366 = vmatpush.msrb.mxu2 %v318_v37 }
  0x3e   :  { %136 = vmatpush.msrb.mxu1 %v62_v38 }
  0x40   :  { %137 = vmatpush.msrb.mxu1 %v61_v39  ;;  %v317_v39 = vld [vmem:[%s1096_s5 + $0x38] sm:$0xff] }
  0x41   :  { %138 = vmatmul.f32.vlgmr.msrb.gmra.mxu1 %v30_v40  ;;  %v316_v40 = vld [vmem:[%s1096_s5 + $0x30] sm:$0xff]  ;;  %367 = vmatpush.msrb.mxu2 %v317_v39 }
  0x43   :  { %368 = vmatpush.msrb.mxu2 %v316_v40 }
  0x49   :  { %141 = vmatmul.f32.gmra.mxu1 %v32_v41 }
  0x51   :  { %144 = vmatmul.f32.gmra.mxu1 %v34_v42  ;;  %v315_v42 = vld [vmem:[%s1096_s5 + $0x28] sm:$0xff] }
  0x52   :  { %369 = vmatpush.msrb.mxu2 %v315_v42  ;;  %v631_v42 = vld [vmem:[%s1097_s6] ss:$0 sm:$0xff] }
  0x59   :  { %147 = vmatmul.f32.gmra.mxu1 %v36_v43 }
  0x61   :  { %150 = vmatmul.f32.gmra.mxu1 %v38_v44 }
  0x69   :  { %153 = vmatmul.f32.gmra.mxu1 %v40_v45  ;;  %v314_v45 = vld [vmem:[%s1096_s5 + $0x20] sm:$0xff] }
  0x6a   :  { %370 = vmatpush.msrb.mxu2 %v314_v45 }
  0x71   :  { %156 = vmatmul.f32.gmra.mxu1 %v42_v46 }
  0x79   :  { %159 = vmatmul.f32.gmra.mxu1 %v44_v47  ;;  %v313_v47 = vld [vmem:[%s1096_s5 + $0x18] sm:$0xff] }
  0x7a   :  { %371 = vmatpush.msrb.mxu2 %v313_v47 }
  0x7c   :  { %372 = vmatpush.msrb.mxu2 %v312_v48 }
  0x7e   :  { %373 = vmatpush.msrb.mxu2 %v311_v50 }
  0x9e   :  { %v110_v54 = vpop.f32.mrf.mxu1  ;;  %v98_v61 = vpop.f32.mrf.mxu0 }
  0x9f   :  { %v99_v0 = vadd.f32 %v890_v63, %v98_v61  ;;  %v111_v22 = vadd.f32 %v890_v63, %v110_v54  ;;  %v310_v54 = vld [vmem:[%s1096_s5] sm:$0xff] }
  0xa0   :  { %374 = vmatpush.msrb.mxu2 %v310_v54 }
  0xa6   :  { %v113_v59 = vpop.f32.mrf.mxu1  ;;  %v101_v1 = vpop.f32.mrf.mxu0 }
  0xa7   :  { %v102_v5 = vadd.f32 %v890_v63, %v101_v1  ;;  %v114_v33 = vadd.f32 %v890_v63, %v113_v59 }
  0xae   :  { %v883_v60 = vpop.f32.mrf.mxu1  ;;  %v104_v7 = vpop.f32.mrf.mxu0 }
  0xaf   :  { %v105_v10 = vadd.f32 %v890_v63, %v104_v7  ;;  %v117_v41 = vadd.f32 %v890_v63, %v883_v60 }
  0xb6   :  { %v885_v62 = vpop.f32.mrf.mxu1  ;;  %v107_v13 = vpop.f32.mrf.mxu0 }
  0xb7   :  { %v108_v15 = vadd.f32 %v890_v63, %v107_v13  ;;  %v120_v49 = vadd.f32 %v890_v63, %v885_v62 }
  0xbe   :  { %v139_v2 = vpop.f32.mrf.mxu1 }
  0xbf   :  { %v140_v3 = vadd.f32 %v139_v2, %v99_v0 }
  0xc1   :  { %v163_v4 = vmax.f32 %v140_v3, 0.0 }
  0xc3   :  { %590 = vmatmul.msk.f32.vlgmr.msra.gmra.mxu2 %vm187_vm0, %v163_v4  ;;  %598 = vmatmul.msk.f32.vlgmr.msra.gmra.mxu3 %vm187_vm0, %v163_v4 }
  0xc6   :  { %v142_v6 = vpop.f32.mrf.mxu1 }
  0xc7   :  { %v143_v8 = vadd.f32 %v142_v6, %v102_v5 }
  0xc9   :  { %v164_v9 = vmax.f32 %v143_v8, 0.0 }
  0xcb   :  { %591 = vmatmul.msk.f32.gmra.mxu2 %vm187_vm0, %v164_v9  ;;  %599 = vmatmul.msk.f32.gmra.mxu3 %vm187_vm0, %v164_v9 }
  0xce   :  { %v145_v11 = vpop.f32.mrf.mxu1 }
  0xcf   :  { %v146_v12 = vadd.f32 %v145_v11, %v105_v10 }
  0xd1   :  { %v165_v14 = vmax.f32 %v146_v12, 0.0 }
  0xd3   :  { %592 = vmatmul.msk.f32.gmra.mxu2 %vm187_vm0, %v165_v14  ;;  %600 = vmatmul.msk.f32.gmra.mxu3 %vm187_vm0, %v165_v14 }
  0xd6   :  { %v148_v16 = vpop.f32.mrf.mxu1 }
  0xd7   :  { %v149_v17 = vadd.f32 %v148_v16, %v108_v15 }
  0xd9   :  { %v166_v18 = vmax.f32 %v149_v17, 0.0 }
  0xdb   :  { %593 = vmatmul.msk.f32.gmra.mxu2 %vm187_vm0, %v166_v18  ;;  %601 = vmatmul.msk.f32.gmra.mxu3 %vm187_vm0, %v166_v18 }
  0xde   :  { %v151_v25 = vpop.f32.mrf.mxu1 }
  0xdf   :  { %v152_v27 = vadd.f32 %v151_v25, %v111_v22 }
  0xe1   :  { %v167_v30 = vmax.f32 %v152_v27, 0.0 }
  0xe3   :  { %594 = vmatmul.msk.f32.gmra.mxu2 %vm187_vm0, %v167_v30  ;;  %602 = vmatmul.msk.f32.gmra.mxu3 %vm187_vm0, %v167_v30 }
  0xe6   :  { %v154_v35 = vpop.f32.mrf.mxu1 }
  0xe7   :  { %v155_v36 = vadd.f32 %v154_v35, %v114_v33 }
  0xe9   :  { %v168_v38 = vmax.f32 %v155_v36, 0.0 }
  0xeb   :  { %595 = vmatmul.msk.f32.gmra.mxu2 %vm187_vm0, %v168_v38  ;;  %603 = vmatmul.msk.f32.gmra.mxu3 %vm187_vm0, %v168_v38 }
  0xee   :  { %v157_v43 = vpop.f32.mrf.mxu1 }
  0xef   :  { %v158_v44 = vadd.f32 %v157_v43, %v117_v41 }
  0xf1   :  { %v169_v46 = vmax.f32 %v158_v44, 0.0 }
  0xf3   :  { %596 = vmatmul.msk.f32.gmra.mxu2 %vm187_vm0, %v169_v46  ;;  %604 = vmatmul.msk.f32.gmra.mxu3 %vm187_vm0, %v169_v46 }
  0xf6   :  { %v160_v51 = vpop.f32.mrf.mxu1 }
  0xf7   :  { %v161_v52 = vadd.f32 %v160_v51, %v120_v49 }
  0xf9   :  { %v170_v53 = vmax.f32 %v161_v52, 0.0 }
  0xfb   :  { %597 = vmatmul.msk.f32.gmra.mxu2 %vm187_vm0, %v170_v53  ;;  %605 = vmatmul.msk.f32.gmra.mxu3 %vm187_vm0, %v170_v53 }
 0x146   :  { %v229_v58 = vpop.f32.mrf.mxu2  ;;  %v270_v59 = vpop.f32.mrf.mxu3 }
 0x147   :  { %v230_v60 = vadd.f32 %v229_v58, %v183_v56  ;;  %v271_v61 = vadd.f32 %v270_v59, %v184_v57  ;;  %v496_v59 = vld [vmem:[%s1099_s7 + $0x78] sm:$0xff] }
 0x148   :  { %497 = vmatpush.msrb.mxu0 %v496_v59 }
 0x149   :  { %v294_v62 = vmax.f32 %v230_v60, 0.0  ;;  %v295_v63 = vmax.f32 %v271_v61, 0.0  ;;  %v495_v60 = vld [vmem:[%s1099_s7 + $0x70] sm:$0xff]  ;;  %v494_v61 = vld [vmem:[%s1099_s7 + $0x68] sm:$0xff] }
 0x14a   :  { %498 = vmatpush.msrb.mxu0 %v495_v60 }
 0x14b   :  { %375 = vmatmul.f32.vlgmr.msrb.gmra.mxu2 %v294_v62  ;;  %606 = vmatmul.msk.f32.vlgmr.msrb.gmra.mxu3 %vm334_vm1, %v295_v63 }
 0x14c   :  { %499 = vmatpush.msrb.mxu0 %v494_v61 }
 0x14e   :  { %v232_v0 = vpop.f32.mrf.mxu2  ;;  %v273_v1 = vpop.f32.mrf.mxu3 }
 0x14f   :  { %v233_v2 = vadd.f32 %v232_v0, %v183_v56  ;;  %v274_v3 = vadd.f32 %v273_v1, %v184_v57  ;;  %v493_v1 = vld [vmem:[%s1099_s7 + $0x60] sm:$0xff] }
 0x150   :  { %500 = vmatpush.msrb.mxu0 %v493_v1 }
 0x151   :  { %v296_v4 = vmax.f32 %v233_v2, 0.0  ;;  %v297_v5 = vmax.f32 %v274_v3, 0.0  ;;  %v492_v3 = vld [vmem:[%s1099_s7 + $0x58] sm:$0xff] }
 0x152   :  { %501 = vmatpush.msrb.mxu0 %v492_v3 }
 0x153   :  { %378 = vmatmul.f32.gmra.mxu2 %v296_v4  ;;  %607 = vmatmul.msk.f32.gmra.mxu3 %vm334_vm1, %v297_v5  ;;  %v491_v4 = vld [vmem:[%s1099_s7 + $0x50] sm:$0xff]  ;;  %v490_v5 = vld [vmem:[%s1099_s7 + $0x48] sm:$0xff] }
 0x154   :  { %502 = vmatpush.msrb.mxu0 %v491_v4 }
 0x156   :  { %v235_v6 = vpop.f32.mrf.mxu2  ;;  %v276_v7 = vpop.f32.mrf.mxu3  ;;  %503 = vmatpush.msrb.mxu0 %v490_v5 }
 0x157   :  { %v236_v8 = vadd.f32 %v235_v6, %v183_v56  ;;  %v277_v9 = vadd.f32 %v276_v7, %v184_v57 }
 0x159   :  { %v298_v10 = vmax.f32 %v236_v8, 0.0  ;;  %v299_v11 = vmax.f32 %v277_v9, 0.0  ;;  %v489_v9 = vld [vmem:[%s1099_s7 + $0x40] sm:$0xff] }
 0x15a   :  { %504 = vmatpush.msrb.mxu0 %v489_v9 }
 0x15b   :  { %381 = vmatmul.f32.gmra.mxu2 %v298_v10  ;;  %608 = vmatmul.msk.f32.gmra.mxu3 %vm334_vm1, %v299_v11  ;;  %v488_v11 = vld [vmem:[%s1099_s7 + $0x38] sm:$0xff] }
 0x15c   :  { %505 = vmatpush.msrb.mxu0 %v488_v11 }
 0x15e   :  { %v238_v12 = vpop.f32.mrf.mxu2  ;;  %v279_v13 = vpop.f32.mrf.mxu3 }
 0x15f   :  { %v239_v14 = vadd.f32 %v238_v12, %v183_v56  ;;  %v280_v15 = vadd.f32 %v279_v13, %v184_v57  ;;  %v487_v12 = vld [vmem:[%s1099_s7 + $0x30] sm:$0xff]  ;;  %v486_v13 = vld [vmem:[%s1099_s7 + $0x28] sm:$0xff] }
 0x160   :  { %506 = vmatpush.msrb.mxu0 %v487_v12 }
 0x161   :  { %v300_v16 = vmax.f32 %v239_v14, 0.0  ;;  %v301_v17 = vmax.f32 %v280_v15, 0.0 }
 0x162   :  { %507 = vmatpush.msrb.mxu0 %v486_v13 }
 0x163   :  { %384 = vmatmul.f32.gmra.mxu2 %v300_v16  ;;  %609 = vmatmul.msk.f32.gmra.mxu3 %vm334_vm1, %v301_v17 }
 0x166   :  { %v241_v18 = vpop.f32.mrf.mxu2  ;;  %v282_v19 = vpop.f32.mrf.mxu3 }
 0x167   :  { %v242_v20 = vadd.f32 %v241_v18, %v183_v56  ;;  %v283_v21 = vadd.f32 %v282_v19, %v184_v57 }
 0x169   :  { %v302_v22 = vmax.f32 %v242_v20, 0.0  ;;  %v303_v23 = vmax.f32 %v283_v21, 0.0 }
 0x16b   :  { %387 = vmatmul.f32.gmra.mxu2 %v302_v22  ;;  %610 = vmatmul.msk.f32.gmra.mxu3 %vm334_vm1, %v303_v23  ;;  %v485_v22 = vld [vmem:[%s1099_s7 + $0x20] sm:$0xff]  ;;  %v484_v23 = vld [vmem:[%s1099_s7 + $0x18] sm:$0xff] }
 0x16c   :  { %508 = vmatpush.msrb.mxu0 %v485_v22 }
 0x16e   :  { %v244_v24 = vpop.f32.mrf.mxu2  ;;  %v285_v25 = vpop.f32.mrf.mxu3  ;;  %509 = vmatpush.msrb.mxu0 %v484_v23 }
 0x16f   :  { %v245_v26 = vadd.f32 %v244_v24, %v183_v56  ;;  %v286_v27 = vadd.f32 %v285_v25, %v184_v57  ;;  %v483_v24 = vld [vmem:[%s1099_s7 + $0x10] sm:$0xff]  ;;  %v482_v25 = vld [vmem:[%s1099_s7 + $0x8] sm:$0xff] }
 0x170   :  { %510 = vmatpush.msrb.mxu0 %v483_v24 }
 0x171   :  { %v304_v28 = vmax.f32 %v245_v26, 0.0  ;;  %v305_v29 = vmax.f32 %v286_v27, 0.0  ;;  %v481_v26 = vld [vmem:[%s1099_s7] sm:$0xff] }
 0x172   :  { %511 = vmatpush.msrb.mxu0 %v482_v25 }
 0x173   :  { %390 = vmatmul.f32.gmra.mxu2 %v304_v28  ;;  %611 = vmatmul.msk.f32.gmra.mxu3 %vm334_vm1, %v305_v29 }
 0x174   :  { %512 = vmatpush.msrb.mxu0 %v481_v26 }
 0x176   :  { %v247_v30 = vpop.f32.mrf.mxu2  ;;  %v288_v31 = vpop.f32.mrf.mxu3 }
 0x177   :  { %v248_v32 = vadd.f32 %v247_v30, %v183_v56  ;;  %v289_v33 = vadd.f32 %v288_v31, %v184_v57 }
 0x179   :  { %v306_v34 = vmax.f32 %v248_v32, 0.0  ;;  %v307_v35 = vmax.f32 %v289_v33, 0.0 }
 0x17b   :  { %393 = vmatmul.f32.gmra.mxu2 %v306_v34  ;;  %612 = vmatmul.msk.f32.gmra.mxu3 %vm334_vm1, %v307_v35 }
 0x17e   :  { %v250_v36 = vpop.f32.mrf.mxu2  ;;  %v291_v37 = vpop.f32.mrf.mxu3 }
 0x17f   :  { %v251_v38 = vadd.f32 %v250_v36, %v183_v56  ;;  %v292_v39 = vadd.f32 %v291_v37, %v184_v57 }
 0x181   :  { %v308_v40 = vmax.f32 %v251_v38, 0.0  ;;  %v309_v41 = vmax.f32 %v292_v39, 0.0 }
 0x183   :  { %396 = vmatmul.f32.gmra.mxu2 %v308_v40  ;;  %613 = vmatmul.msk.f32.gmra.mxu3 %vm334_vm1, %v309_v41 }
 0x1ce   :  { %v376_v43 = vpop.f32.mrf.mxu2  ;;  %v417_v44 = vpop.f32.mrf.mxu3 }
 0x1cf   :  { %v377_v45 = vadd.f32 %v631_v42, %v376_v43 }
 0x1d1   :  { %v992_v46 = vadd.f32 %v417_v44, %v377_v45 }
 0x1d3   :  { %441 = vmax.xlane.f32.xlu0 %v992_v46 }
 0x1d6   :  { %v379_v47 = vpop.f32.mrf.mxu2  ;;  %v420_v48 = vpop.f32.mrf.mxu3 }
 0x1d7   :  { %v380_v49 = vadd.f32 %v631_v42, %v379_v47 }
 0x1d9   :  { %v995_v50 = vadd.f32 %v420_v48, %v380_v49 }
 0x1db   :  { %443 = vmax.xlane.f32.xlu0 %v995_v50 }
 0x1de   :  { %v382_v51 = vpop.f32.mrf.mxu2  ;;  %v423_v52 = vpop.f32.mrf.mxu3 }
 0x1df   :  { %v383_v53 = vadd.f32 %v631_v42, %v382_v51 }
 0x1e1   :  { %v998_v54 = vadd.f32 %v423_v52, %v383_v53 }
 0x1e3   :  { %445 = vmax.xlane.f32.xlu1 %v998_v54 }
 0x1e6   :  { %v385_v55 = vpop.f32.mrf.mxu2  ;;  %v426_v56 = vpop.f32.mrf.mxu3 }
 0x1e7   :  { %v386_v57 = vadd.f32 %v631_v42, %v385_v55 }
 0x1e9   :  { %v1001_v58 = vadd.f32 %v426_v56, %v386_v57 }
 0x1eb   :  { %447 = vmax.xlane.f32.xlu1 %v1001_v58 }
 0x1ee   :  { %v388_v62 = vpop.f32.mrf.mxu2  ;;  %v429_v63 = vpop.f32.mrf.mxu3 }
 0x1ef   :  { %v389_v0 = vadd.f32 %v631_v42, %v388_v62 }
 0x1f1   :  { %v1016_v2 = vadd.f32 %v429_v63, %v389_v0 }
 0x1f3   :  { %449 = vmax.xlane.f32.xlu2 %v1016_v2 }
 0x1f6   :  { %v391_v6 = vpop.f32.mrf.mxu2  ;;  %v432_v7 = vpop.f32.mrf.mxu3 }
 0x1f7   :  { %v392_v8 = vadd.f32 %v631_v42, %v391_v6 }
 0x1f9   :  { %v433_v10 = vadd.f32 %v432_v7, %v392_v8 }
 0x1fb   :  { %451 = vmax.xlane.f32.xlu2 %v433_v10 }
 0x1fe   :  { %v394_v14 = vpop.f32.mrf.mxu2  ;;  %v435_v15 = vpop.f32.mrf.mxu3 }
 0x1ff   :  { %v395_v16 = vadd.f32 %v631_v42, %v394_v14 }
 0x201   :  { %v436_v17 = vadd.f32 %v435_v15, %v395_v16 }
 0x203   :  { %453 = vmax.xlane.f32.xlu0 %v436_v17 }
 0x206   :  { %v397_v18 = vpop.f32.mrf.mxu2  ;;  %v438_v20 = vpop.f32.mrf.mxu3 }
 0x207   :  { %v398_v19 = vadd.f32 %v631_v42, %v397_v18 }
 0x209   :  { %v439_v21 = vadd.f32 %v438_v20, %v398_v19 }
 0x20b   :  { %455 = vmax.xlane.f32.xlu1 %v439_v21 }
 0x246   :  { %v442_v27 = vpop.xlane.xlu0 %441 }
 0x247   :  { %v457_v28 = vsub.f32 %v992_v46, %v442_v27 }
 0x249   :  { %v465_v29 = vmul.f32 1.442695, %v457_v28 }
 0x24b   :  { %632 = vpow2.f32 %v465_v29 }
 0x24e   :  { %v444_v30 = vpop.xlane.xlu0 %443 }
 0x24f   :  { %v458_v31 = vsub.f32 %v995_v50, %v444_v30 }
 0x251   :  { %v633_v32 = vpop.eup %632  ;;  %v467_v33 = vmul.f32 1.442695, %v458_v31 }
 0x252   :  { %513 = vmatmul.f32.vlgmr.msrb.gmra.mxu0 %v633_v32 }
 0x253   :  { %634 = vpow2.f32 %v467_v33 }
 0x256   :  { %v446_v34 = vpop.xlane.xlu1 %445 }
 0x257   :  { %v459_v35 = vsub.f32 %v998_v54, %v446_v34 }
 0x259   :  { %v635_v36 = vpop.eup %634  ;;  %v469_v37 = vmul.f32 1.442695, %v459_v35 }
 0x25a   :  { %516 = vmatmul.f32.gmra.mxu0 %v635_v36 }
 0x25b   :  { %636 = vpow2.f32 %v469_v37 }
 0x25e   :  { %v448_v38 = vpop.xlane.xlu1 %447 }
 0x25f   :  { %v460_v39 = vsub.f32 %v1001_v58, %v448_v38 }
 0x261   :  { %v637_v40 = vpop.eup %636  ;;  %v471_v41 = vmul.f32 1.442695, %v460_v39 }
 0x262   :  { %519 = vmatmul.f32.gmra.mxu0 %v637_v40 }
 0x263   :  { %638 = vpow2.f32 %v471_v41 }
 0x266   :  { %v450_v42 = vpop.xlane.xlu2 %449 }
 0x267   :  { %v461_v43 = vsub.f32 %v1016_v2, %v450_v42 }
 0x269   :  { %v639_v44 = vpop.eup %638  ;;  %v473_v45 = vmul.f32 1.442695, %v461_v43 }
 0x26a   :  { %522 = vmatmul.f32.gmra.mxu0 %v639_v44 }
 0x26b   :  { %640 = vpow2.f32 %v473_v45 }
 0x26e   :  { %v452_v46 = vpop.xlane.xlu2 %451 }
 0x26f   :  { %v462_v47 = vsub.f32 %v433_v10, %v452_v46 }
 0x271   :  { %v641_v48 = vpop.eup %640  ;;  %v475_v49 = vmul.f32 1.442695, %v462_v47 }
 0x272   :  { %525 = vmatmul.f32.gmra.mxu0 %v641_v48 }
 0x273   :  { %642 = vpow2.f32 %v475_v49 }
 0x276   :  { %v454_v50 = vpop.xlane.xlu0 %453 }
 0x277   :  { %v463_v51 = vsub.f32 %v436_v17, %v454_v50 }
 0x279   :  { %v643_v52 = vpop.eup %642  ;;  %v477_v53 = vmul.f32 1.442695, %v463_v51 }
 0x27a   :  { %528 = vmatmul.f32.gmra.mxu0 %v643_v52 }
 0x27b   :  { %644 = vpow2.f32 %v477_v53 }
 0x27e   :  { %v456_v54 = vpop.xlane.xlu1 %455 }
 0x27f   :  { %v464_v55 = vsub.f32 %v439_v21, %v456_v54 }
 0x281   :  { %v1060_v56 = vpop.eup %644  ;;  %v479_v57 = vmul.f32 1.442695, %v464_v55 }
 0x282   :  { %531 = vmatmul.f32.gmra.mxu0 %v1060_v56 }
 0x283   :  { %646 = vpow2.f32 %v479_v57 }
 0x289   :  { %v1063_v58 = vpop.eup %646 }
 0x28a   :  { %534 = vmatmul.f32.gmra.mxu0 %v1063_v58 }
 0x2cf   :  { %v514_v59 = vpop.f32.mrf.mxu0 }
 0x2d0   :  { %648 = vrcp.f32 %v514_v59 }
 0x2d6   :  { %v649_v60 = vpop.eup %648 }
 0x2d7   :  { %v546_v61 = vmul.f32 %v649_v60, %v514_v59  ;;  %v517_v62 = vpop.f32.mrf.mxu0 }
 0x2d8   :  { %650 = vrcp.f32 %v517_v62 }
 0x2d9   :  { %v554_v63 = vsub.f32 2.0, %v546_v61 }
 0x2db   :  { %v562_v0 = vmul.f32 %v649_v60, %v554_v63 }
 0x2dd   :  { %v570_v1 = vmul.f32 %v633_v32, %v562_v0 }
 0x2de   :  { %v651_v2 = vpop.eup %650 }
 0x2df   :  { %578 = vst [vmem:[%s1100_s8] sm:$0xff] %v570_v1  ;;  %v547_v3 = vmul.f32 %v651_v2, %v517_v62  ;;  %v520_v4 = vpop.f32.mrf.mxu0 }
 0x2e0   :  { %652 = vrcp.f32 %v520_v4 }
 0x2e1   :  { %v555_v5 = vsub.f32 2.0, %v547_v3 }
 0x2e3   :  { %v563_v6 = vmul.f32 %v651_v2, %v555_v5 }
 0x2e5   :  { %v571_v7 = vmul.f32 %v635_v36, %v563_v6 }
 0x2e6   :  { %v653_v8 = vpop.eup %652 }
 0x2e7   :  { %579 = vst [vmem:[%s1100_s8 + $0x8] sm:$0xff] %v571_v7  ;;  %v548_v9 = vmul.f32 %v653_v8, %v520_v4  ;;  %v523_v10 = vpop.f32.mrf.mxu0 }
 0x2e8   :  { %654 = vrcp.f32 %v523_v10 }
 0x2e9   :  { %v556_v11 = vsub.f32 2.0, %v548_v9 }
 0x2eb   :  { %v564_v12 = vmul.f32 %v653_v8, %v556_v11 }
 0x2ed   :  { %v572_v13 = vmul.f32 %v637_v40, %v564_v12 }
 0x2ee   :  { %v655_v14 = vpop.eup %654 }
 0x2ef   :  { %580 = vst [vmem:[%s1100_s8 + $0x10] sm:$0xff] %v572_v13  ;;  %v549_v15 = vmul.f32 %v655_v14, %v523_v10  ;;  %v526_v16 = vpop.f32.mrf.mxu0 }
 0x2f0   :  { %656 = vrcp.f32 %v526_v16 }
 0x2f1   :  { %v557_v17 = vsub.f32 2.0, %v549_v15 }
 0x2f3   :  { %v565_v18 = vmul.f32 %v655_v14, %v557_v17 }
 0x2f5   :  { %v573_v19 = vmul.f32 %v639_v44, %v565_v18 }
 0x2f6   :  { %v657_v20 = vpop.eup %656 }
 0x2f7   :  { %581 = vst [vmem:[%s1100_s8 + $0x18] sm:$0xff] %v573_v19  ;;  %v550_v21 = vmul.f32 %v657_v20, %v526_v16  ;;  %v529_v22 = vpop.f32.mrf.mxu0 }
 0x2f8   :  { %658 = vrcp.f32 %v529_v22 }
 0x2f9   :  { %v558_v23 = vsub.f32 2.0, %v550_v21 }
 0x2fb   :  { %v566_v24 = vmul.f32 %v657_v20, %v558_v23 }
 0x2fd   :  { %v574_v25 = vmul.f32 %v641_v48, %v566_v24 }
 0x2fe   :  { %v659_v26 = vpop.eup %658 }
 0x2ff   :  { %582 = vst [vmem:[%s1100_s8 + $0x20] sm:$0xff] %v574_v25  ;;  %v551_v27 = vmul.f32 %v659_v26, %v529_v22  ;;  %v532_v28 = vpop.f32.mrf.mxu0 }
 0x300   :  { %660 = vrcp.f32 %v532_v28 }
 0x301   :  { %v559_v29 = vsub.f32 2.0, %v551_v27 }
 0x303   :  { %v567_v30 = vmul.f32 %v659_v26, %v559_v29 }
 0x305   :  { %v575_v31 = vmul.f32 %v643_v52, %v567_v30 }
 0x306   :  { %v661_v32 = vpop.eup %660 }
 0x307   :  { %583 = vst [vmem:[%s1100_s8 + $0x28] sm:$0xff] %v575_v31  ;;  %v552_v33 = vmul.f32 %v661_v32, %v532_v28  ;;  %v535_v34 = vpop.f32.mrf.mxu0 }
 0x308   :  { %662 = vrcp.f32 %v535_v34 }
 0x309   :  { %v560_v35 = vsub.f32 2.0, %v552_v33 }
 0x30b   :  { %v568_v36 = vmul.f32 %v661_v32, %v560_v35 }
 0x30d   :  { %v576_v37 = vmul.f32 %v1060_v56, %v568_v36 }
 0x30e   :  { %v663_v38 = vpop.eup %662 }
 0x30f   :  { %584 = vst [vmem:[%s1100_s8 + $0x30] sm:$0xff] %v576_v37  ;;  %v553_v39 = vmul.f32 %v663_v38, %v535_v34 }
 0x311   :  { %v561_v40 = vsub.f32 2.0, %v553_v39 }
 0x313   :  { %v569_v41 = vmul.f32 %v663_v38, %v561_v40 }
 0x315   :  { %v577_v42 = vmul.f32 %v1063_v58, %v569_v41 }
 0x317   :  { %585 = vst [vmem:[%s1100_s8 + $0x38] sm:$0xff] %v577_v42 }

</bundles_post_ra>
